<compile_context>
chip_gen: v5e
topology: v5e:2x2
jax: 0.10.0
libtpu: 0.0.40
codegen_flags: <defaults>
</compile_context>

<pallas_src>
import jax
import jax.numpy as jnp
from jax.experimental import pallas as pl
from jax.experimental.pallas import tpu as pltpu


_MAX_DMA_CHUNKS = 8           # up to 8 concurrent HBM->HBM DMAs
_MIN_CHUNK_BYTES = 1 << 20    # don't bother splitting below ~1 MiB per chunk


def _make_identity_dma_kernel(chunks):
    """Build a kernel that copies `chunks` [(row_start, row_size), ...] of a 2D
    HBM ref into the HBM output via concurrent async DMAs."""

    def kernel(x_hbm, o_hbm, sem):
        copies = []
        # Issue every chunk's DMA first (all in flight concurrently) ...
        for i, (start, size) in enumerate(chunks):
            cp = pltpu.make_async_copy(
                x_hbm.at[pl.ds(start, size), :],
                o_hbm.at[pl.ds(start, size), :],
                sem.at[i],
            )
            cp.start()
            copies.append(cp)
        # ... then wait on all of them.
        for cp in copies:
            cp.wait()

    return kernel


def identity_copy_pallas(x):
    """Materialize y = x as a direct HBM->HBM DMA copy (pure HBM bandwidth)."""
    if x.size == 0:
        return x  # nothing to copy

    orig_shape = x.shape
    if x.ndim == 0:
        x2 = x.reshape(1, 1)
    elif x.ndim == 1:
        x2 = x.reshape(1, -1)
    else:
        x2 = x.reshape(-1, orig_shape[-1])

    rows, cols = x2.shape
    itemsize = jnp.dtype(x.dtype).itemsize
    total_bytes = rows * cols * itemsize

    # Split the row axis into a handful of contiguous chunks (>= 1 MiB each,
    # at most 8, never more than `rows`). Each chunk is a contiguous byte
    # range of the row-major array, so every DMA descriptor is contiguous.
    n_chunks = min(_MAX_DMA_CHUNKS, rows, max(1, total_bytes // _MIN_CHUNK_BYTES))
    n_chunks = max(1, n_chunks)
    base, rem = divmod(rows, n_chunks)
    chunks = []
    start = 0
    for i in range(n_chunks):
        size = base + (1 if i < rem else 0)
        chunks.append((start, size))
        start += size

    out2 = pl.pallas_call(
        _make_identity_dma_kernel(chunks),
        out_shape=jax.ShapeDtypeStruct((rows, cols), x.dtype),
        in_specs=[pl.BlockSpec(memory_space=pl.ANY)],   # raw HBM ref, no auto-DMA
        out_specs=pl.BlockSpec(memory_space=pl.ANY),    # raw HBM ref, written by DMA
        scratch_shapes=[pltpu.SemaphoreType.DMA((len(chunks),))],
        cost_estimate=pl.CostEstimate(
            flops=0,
            transcendentals=0,
            bytes_accessed=2 * total_bytes,
        ),
    )(x2)

    return out2.reshape(orig_shape)


def identity_map(x, *args, materialize=False, **kwargs):
    """Pallas equivalent of IdentityMap.forward: returns x unchanged.

    Default (fast) path: no kernel, no HBM traffic — just return x, exactly
    like the PyTorch module. Set materialize=True only if a fresh output
    buffer is contractually required; that path runs the HBM->HBM DMA kernel.
    Extra *args/**kwargs are accepted (and ignored) to match the signature.
    """
    if not materialize:
        return x
    return identity_copy_pallas(x)


# The module's `config` property, for completeness (no compute involved).
IDENTITY_MAP_CONFIG = {"mm_projector_type": "identity"}


if __name__ == "__main__":
    key = jax.random.PRNGKey(0)

    # Small shape consistent with an mm_projector input: (batch, seq, hidden).
    x = jax.random.normal(key, (2, 8, 32), dtype=jnp.float32)

    # Fast path: identity returns the input (no kernel launch at all).
    # (Object-identity check is only meaningful in eager mode, fine here.)
    y_fast = identity_map(x)
    assert y_fast is x

    # DMA copy path: exercise the kernel once (single-chunk case).
    y = jax.block_until_ready(identity_map(x, materialize=True))
    assert y.shape == x.shape, (y.shape, x.shape)
    assert y.dtype == x.dtype, (y.dtype, x.dtype)
    assert bool(jnp.array_equal(y, x)), "identity kernel must return x exactly"

    # bf16 with a lane-aligned hidden dim and odd row count.
    xb = jax.random.normal(jax.random.PRNGKey(0), (3, 7, 128)).astype(jnp.bfloat16)
    yb = jax.block_until_ready(identity_map(xb, materialize=True))
    assert yb.shape == xb.shape and yb.dtype == xb.dtype
    assert bool(jnp.array_equal(yb, xb))

    # ~2 MiB f32 tensor -> exercises the multi-chunk concurrent-DMA path.
    xc = jax.random.normal(jax.random.PRNGKey(0), (8, 256, 256), dtype=jnp.float32)
    yc = jax.block_until_ready(identity_map(xc, materialize=True))
    assert yc.shape == xc.shape and yc.dtype == xc.dtype
    assert bool(jnp.array_equal(yc, xc))

    print("KERNEL_OK")
</pallas_src>

<mosaic_0001>
module attributes {stable_mosaic.version = 11 : i64} {
  func.func @kernel(%arg0: memref<16x32xf32, #tpu.memory_space<any>>, %arg1: memref<16x32xf32, #tpu.memory_space<any>>, %arg2: memref<1x!tpu.dma_semaphore, #tpu.memory_space<semaphore_mem>>) attributes {dimension_semantics = [], scalar_prefetch = 0 : i64, scratch_operands = 1 : i64, tpu.core_type = #tpu.core_type<tc>} {
    %c0_i32 = arith.constant 0 : i32
    %c0_i32_0 = arith.constant 0 : i32
    %c0_i32_1 = arith.constant 0 : i32
    %0 = tpu.memref_slice %arg0[%c0_i32_0, %c0_i32_1] : memref<16x32xf32, #tpu.memory_space<any>> -> memref<16x32xf32, #tpu.memory_space<any>>
    %c0_i32_2 = arith.constant 0 : i32
    %c0_i32_3 = arith.constant 0 : i32
    %1 = tpu.memref_slice %arg1[%c0_i32_2, %c0_i32_3] : memref<16x32xf32, #tpu.memory_space<any>> -> memref<16x32xf32, #tpu.memory_space<any>>
    %2 = tpu.memref_slice %arg2[%c0_i32] : memref<1x!tpu.dma_semaphore, #tpu.memory_space<semaphore_mem>> -> memref<1x!tpu.dma_semaphore, #tpu.memory_space<semaphore_mem>>
    %3 = tpu.memref_squeeze %2 : memref<1x!tpu.dma_semaphore, #tpu.memory_space<semaphore_mem>> -> memref<!tpu.dma_semaphore, #tpu.memory_space<semaphore_mem>>
    tpu.enqueue_dma source(%0 : memref<16x32xf32, #tpu.memory_space<any>>) target(%1 : memref<16x32xf32, #tpu.memory_space<any>>) target_semaphore(%3 : memref<!tpu.dma_semaphore, #tpu.memory_space<semaphore_mem>>)
    %c0_i32_4 = arith.constant 0 : i32
    %c0_i32_5 = arith.constant 0 : i32
    %c0_i32_6 = arith.constant 0 : i32
    %4 = tpu.memref_slice %arg0[%c0_i32_5, %c0_i32_6] : memref<16x32xf32, #tpu.memory_space<any>> -> memref<16x32xf32, #tpu.memory_space<any>>
    %c0_i32_7 = arith.constant 0 : i32
    %c0_i32_8 = arith.constant 0 : i32
    %5 = tpu.memref_slice %arg1[%c0_i32_7, %c0_i32_8] : memref<16x32xf32, #tpu.memory_space<any>> -> memref<16x32xf32, #tpu.memory_space<any>>
    %6 = tpu.memref_slice %arg2[%c0_i32_4] : memref<1x!tpu.dma_semaphore, #tpu.memory_space<semaphore_mem>> -> memref<1x!tpu.dma_semaphore, #tpu.memory_space<semaphore_mem>>
    %7 = tpu.memref_squeeze %6 : memref<1x!tpu.dma_semaphore, #tpu.memory_space<semaphore_mem>> -> memref<!tpu.dma_semaphore, #tpu.memory_space<semaphore_mem>>
    tpu.wait_dma2 semaphore(%7 : memref<!tpu.dma_semaphore, #tpu.memory_space<semaphore_mem>>) src(%4 : memref<16x32xf32, #tpu.memory_space<any>>) dst(%5 : memref<16x32xf32, #tpu.memory_space<any>>)
    return
  }
}

</mosaic_0001>

<bundles_post_ra>
// kernel: tpu_custom_call.1
= control target key start
LH: loop header
LB: loop body
LE: loop exit
PB: predicated region body
PF: predicated region fallthrough
CT: control target
= control target key end

     0   :  { %s32_s12 = smov [#allocation2]   ;;  %s33_s13 = smov [#allocation3]   ;;  %s51_s0 = inlined_call_operand.hbm [shape: f32[16,32], index: 0, kind: input, shape index: {}]   ;;  %s52_s1 = inlined_call_operand.hbm [shape: f32[16,32], index: 1, kind: output, shape index: {}]  }
   0x1   :  { %s10_s8 = sshll.u32 %s51_s0, 4  ;;  %s12_s11 = sshll.u32 %s52_s1, 4  ;;  %s11_s8 = int_to_ptr.hbm [resolvable:$true] %s10_s8  ;;  %s13_s11 = int_to_ptr.hbm [resolvable:$true] %s12_s11 }
   0x2   :  { %s34_s14 = smov 0  }
   0x3   :  { %16 = dma.general %s11_s8, 256, %s13_s11, %s32_s12, %s33_s13, [#allocation4], %s34_s14, 0  }
   0x4   :  { %30 = dma.done.wait [#allocation2], 256 }
   0x5   :  { %31 = vsyncadd [#allocation2], 4294967040 }
   0x6   :  { %20 = vsyncmov [#allocation2] }
   0x9   :  { %s21_s15 = vpop.sfrf %20 }
   0xa   :  { %p26_p0 = scmp.ne.s32.totalorder %s21_s15, 0 }
   0xc   :  { %25 = shalt.err (%p26_p0)  }

</bundles_post_ra>
